<compile_context>
chip_gen: v7x
topology: tpu7x:2x2x1
jax: 0.10.0
libtpu: 0.0.40
codegen_flags: <defaults>
</compile_context>

<pallas_src>
import functools

import jax
import jax.numpy as jnp
from jax.experimental import pallas as pl
from jax.experimental.pallas import tpu as pltpu

HIDDEN = 128      # fixed by the module definition
_LANE = 128
_BF16_SUBLANE = 16   # bf16 packs 16 rows per vreg


def _round_up(n, m):
    return ((n + m - 1) // m) * m


# --------------------------------------------------------------------------- #
# Kernel
# --------------------------------------------------------------------------- #
def autoencoder_kernel(x_ref,
                       w1_ref, b1_ref,
                       w23_ref, b23_ref,
                       w4_ref, b4_ref,
                       out_ref):
    # x arrives in its HBM dtype (f32); cast to bf16 in-kernel (VPU has slack)
    # so the wrapper never does an extra cast pass over HBM.
    x = x_ref[...].astype(jnp.bfloat16)

    # encoder first Linear + ReLU
    h1 = jnp.dot(x, w1_ref[...], preferred_element_type=jnp.float32) + b1_ref[...]
    h1 = jnp.maximum(h1, 0.0)

    # fused (encoder second Linear) o (decoder first Linear) + ReLU
    h2 = jnp.dot(h1.astype(jnp.bfloat16), w23_ref[...],
                 preferred_element_type=jnp.float32) + b23_ref[...]
    h2 = jnp.maximum(h2, 0.0)

    # decoder second Linear
    y = jnp.dot(h2.astype(jnp.bfloat16), w4_ref[...],
                preferred_element_type=jnp.float32) + b4_ref[...]

    out_ref[...] = y.astype(out_ref.dtype)          # bf16 store (half the writeback)


# --------------------------------------------------------------------------- #
# Parameter preparation (padding + middle-Linear fusion)
# --------------------------------------------------------------------------- #
def prepare_params(params, input_dim, embedding_dim):
    """Pad the input/output feature dim to a lane multiple, fuse w2/w3, cast bf16.

    Padding is mathematically exact: padded x columns are zero, padded weight
    rows/cols and bias entries are zero, and padded output columns are sliced
    away (only when padding actually happened).
    The w2@w3 fusion is exact in f32 (done at HIGHEST precision) up to the same
    bf16 cast the unfused path would apply; it is legal because the embedding
    is not returned by forward().
    """
    dp = _round_up(input_dim, _LANE)

    w23 = jnp.dot(params["w2"], params["w3"],
                  precision=jax.lax.Precision.HIGHEST)                  # (128,128)
    b23 = jnp.dot(params["b2"], params["w3"],
                  precision=jax.lax.Precision.HIGHEST) + params["b3"]   # (1,128)

    def pad_w(w, rows, cols):
        r, c = w.shape
        return jnp.pad(w, ((0, rows - r), (0, cols - c))).astype(jnp.bfloat16)

    def pad_b(b, cols):
        return jnp.pad(b, ((0, 0), (0, cols - b.shape[1]))).astype(jnp.float32)

    return {
        "w1": pad_w(params["w1"], dp, HIDDEN), "b1": pad_b(params["b1"], HIDDEN),
        "w23": w23.astype(jnp.bfloat16),       "b23": b23.astype(jnp.float32),
        "w4": pad_w(params["w4"], HIDDEN, dp), "b4": pad_b(params["b4"], dp),
        "dp": dp, "input_dim": input_dim, "embedding_dim": embedding_dim,
    }


# --------------------------------------------------------------------------- #
# VMEM budgeting (generation aware)
# --------------------------------------------------------------------------- #
def _vmem_cap_bytes():
    cap = 64 * 1024 * 1024            # conservative default if query unavailable
    try:
        cap = int(pltpu.get_tpu_info().vmem_capacity_bytes)
    except Exception:
        pass
    if cap >= 128 * 1024 * 1024:      # v5e / v6e: 128 MiB physical
        return 100 * 1024 * 1024
    # v7x-class (64 MiB per TC): leave headroom for compiler-internal scratch.
    return max(min(cap - 8 * 1024 * 1024, 56 * 1024 * 1024), 16 * 1024 * 1024)


def _vmem_estimate(tile_b, dp, x_itemsize):
    weights = (dp * HIDDEN + HIDDEN * HIDDEN + HIDDEN * dp) * 2   # bf16
    biases = (2 * HIDDEN + dp) * 4
    io = 2 * tile_b * dp * (x_itemsize + 2)                        # 2x-buffered x + bf16 out
    inter = tile_b * (2 * dp + 2 * HIDDEN * 4 + dp * 4)            # bf16 x, h1/h2/y in f32
    return 2 * weights + biases + io + inter + (1 << 20)           # slack


# --------------------------------------------------------------------------- #
# Forward wrapper
# --------------------------------------------------------------------------- #
def _const_spec(shape, single_buffer):
    idx = lambda i: (0, 0)            # constant block index -> DMA'd once, resident
    if single_buffer and hasattr(pl, "Buffered"):
        try:
            return pl.BlockSpec(shape, idx, pipeline_mode=pl.Buffered(1))
        except TypeError:
            pass
    return pl.BlockSpec(shape, idx)


def autoencoder_forward(x, prepared, *, tile_b=512, out_dtype=jnp.bfloat16):
    """x: (B, input_dim) float. prepared: output of prepare_params()."""
    B, D = x.shape
    dp = prepared["dp"]
    assert D == prepared["input_dim"]

    if B < tile_b:
        tile_b = _round_up(max(B, 1), _BF16_SUBLANE)   # bf16 out tile packs 16 rows

    x_itemsize = jnp.dtype(x.dtype).itemsize
    vmem_cap = _vmem_cap_bytes()
    while _vmem_estimate(tile_b, dp, x_itemsize) > vmem_cap and tile_b > 64:
        tile_b //= 2

    bp = _round_up(B, tile_b)
    num_tiles = bp // tile_b

    needs_pad = (bp != B) or (dp != D)
    x_in = jnp.pad(x, ((0, bp - B), (0, dp - D))) if needs_pad else x

    weight_elems = dp * HIDDEN + HIDDEN * HIDDEN + HIDDEN * dp
    flops = 2 * bp * weight_elems
    bytes_accessed = (bp * dp * x_itemsize          # x in its native dtype
                      + bp * dp * 2                  # bf16 output
                      + weight_elems * 2             # bf16 weights
                      + (2 * HIDDEN + dp) * 4)       # f32 biases

    def run(single_buffer_weights):
        in_specs = [
            pl.BlockSpec((tile_b, dp), lambda i: (i, 0)),     # x tile, pipelined
            _const_spec((dp, HIDDEN), single_buffer_weights),
            _const_spec((1, HIDDEN), single_buffer_weights),
            _const_spec((HIDDEN, HIDDEN), single_buffer_weights),
            _const_spec((1, HIDDEN), single_buffer_weights),
            _const_spec((HIDDEN, dp), single_buffer_weights),
            _const_spec((1, dp), single_buffer_weights),
        ]
        out_specs = pl.BlockSpec((tile_b, dp), lambda i: (i, 0))
        return pl.pallas_call(
            autoencoder_kernel,
            out_shape=jax.ShapeDtypeStruct((bp, dp), jnp.bfloat16),
            grid_spec=pltpu.PrefetchScalarGridSpec(
                num_scalar_prefetch=0,
                grid=(num_tiles,),
                in_specs=in_specs,
                out_specs=out_specs,
            ),
            compiler_params=pltpu.CompilerParams(
                dimension_semantics=("parallel",),
                vmem_limit_bytes=int(vmem_cap),
            ),
            cost_estimate=pl.CostEstimate(
                flops=flops, transcendentals=0, bytes_accessed=bytes_accessed),
        )(x_in,
          prepared["w1"], prepared["b1"],
          prepared["w23"], prepared["b23"],
          prepared["w4"], prepared["b4"])

    try:
        out_p = run(True)             # single-buffered resident weights
    except Exception:
        out_p = run(False)            # fallback if Buffered(1) unsupported here

    out = out_p[:B, :D] if needs_pad else out_p
    return out if out.dtype == out_dtype else out.astype(out_dtype)


# --------------------------------------------------------------------------- #
# Init + references + test
# --------------------------------------------------------------------------- #
def init_params(key, input_dim, embedding_dim, hidden=HIDDEN):
    """Deterministic init; weights stored (in, out), biases (1, out)."""
    ks = jax.random.split(key, 8)

    def lin(kw, kb, fan_in, fan_out):
        bound = 1.0 / jnp.sqrt(jnp.float32(fan_in))
        w = jax.random.uniform(kw, (fan_in, fan_out), jnp.float32, -bound, bound)
        b = jax.random.uniform(kb, (1, fan_out), jnp.float32, -bound, bound)
        return w, b

    w1, b1 = lin(ks[0], ks[1], input_dim, hidden)
    w2, b2 = lin(ks[2], ks[3], hidden, embedding_dim)
    w3, b3 = lin(ks[4], ks[5], embedding_dim, hidden)
    w4, b4 = lin(ks[6], ks[7], hidden, input_dim)
    return {"w1": w1, "b1": b1, "w2": w2, "b2": b2,
            "w3": w3, "b3": b3, "w4": w4, "b4": b4}


def reference_forward_f32(x, params):
    """Pure-f32 reference matching the PyTorch module's math."""
    h1 = jnp.maximum(x @ params["w1"] + params["b1"], 0.0)
    z = h1 @ params["w2"] + params["b2"]
    h2 = jnp.maximum(z @ params["w3"] + params["b3"], 0.0)
    return h2 @ params["w4"] + params["b4"]


if __name__ == "__main__":
    input_dim = 16
    embedding_dim = 10
    batch = 8

    key = jax.random.PRNGKey(0)
    k_x, k_p = jax.random.split(key)
    x = jax.random.normal(k_x, (batch, input_dim), jnp.float32)
    params = init_params(k_p, input_dim, embedding_dim)
    prepared = prepare_params(params, input_dim, embedding_dim)

    out = autoencoder_forward(x, prepared, out_dtype=jnp.float32)
    jax.block_until_ready(out)
    assert out.shape == (batch, input_dim)

    ref = reference_forward_f32(x, params)
    # bf16 matmul inputs / bf16 output => loose tolerance vs pure-f32 reference
    max_err = jnp.max(jnp.abs(out - ref))
    assert jnp.allclose(out, ref, atol=6e-2, rtol=6e-2), f"max abs err {max_err}"

    print("KERNEL_OK")
</pallas_src>

<mosaic_0001>
module attributes {stable_mosaic.version = 11 : i64} {
  func.func @autoencoder_kernel(%arg0: i32, %arg1: memref<16x128xf32, #tpu.memory_space<vmem>>, %arg2: memref<128x128xbf16, #tpu.memory_space<vmem>>, %arg3: memref<1x128xf32, #tpu.memory_space<vmem>>, %arg4: memref<128x128xbf16, #tpu.memory_space<vmem>>, %arg5: memref<1x128xf32, #tpu.memory_space<vmem>>, %arg6: memref<128x128xbf16, #tpu.memory_space<vmem>>, %arg7: memref<1x128xf32, #tpu.memory_space<vmem>>, %arg8: memref<16x128xbf16, #tpu.memory_space<vmem>>) attributes {dimension_semantics = [#tpu.dimension_semantics<parallel>], iteration_bounds = array<i64: 1>, scalar_prefetch = 0 : i64, scratch_operands = 0 : i64, tpu.core_type = #tpu.core_type<tc>, window_params = [{transform_indices = @transform_0, window_bounds = array<i64: 16, 128>}, {pipeline_mode = #tpu.pipeline_mode<synchronous>, transform_indices = @transform_1, window_bounds = array<i64: 128, 128>}, {pipeline_mode = #tpu.pipeline_mode<synchronous>, transform_indices = @transform_2, window_bounds = array<i64: 1, 128>}, {pipeline_mode = #tpu.pipeline_mode<synchronous>, transform_indices = @transform_3, window_bounds = array<i64: 128, 128>}, {pipeline_mode = #tpu.pipeline_mode<synchronous>, transform_indices = @transform_4, window_bounds = array<i64: 1, 128>}, {pipeline_mode = #tpu.pipeline_mode<synchronous>, transform_indices = @transform_5, window_bounds = array<i64: 128, 128>}, {pipeline_mode = #tpu.pipeline_mode<synchronous>, transform_indices = @transform_6, window_bounds = array<i64: 1, 128>}, {transform_indices = @transform_7, window_bounds = array<i64: 16, 128>}]} {
    %c0 = arith.constant 0 : index
    %c0_0 = arith.constant 0 : index
    %0 = vector.load %arg1[%c0, %c0_0] : memref<16x128xf32, #tpu.memory_space<vmem>>, vector<16x128xf32>
    %1 = arith.truncf %0 : vector<16x128xf32> to vector<16x128xbf16>
    %c0_1 = arith.constant 0 : index
    %c0_2 = arith.constant 0 : index
    %2 = vector.load %arg2[%c0_1, %c0_2] : memref<128x128xbf16, #tpu.memory_space<vmem>>, vector<128x128xbf16>
    %cst = arith.constant dense<0.000000e+00> : vector<16x128xf32>
    %3 = tpu.matmul %1, %2, %cst {dimension_numbers = #tpu.dot_dimension_numbers<[1], [0], [0], [1], [0, 0, 1, 1], [], []>} : vector<16x128xbf16>, vector<128x128xbf16>, vector<16x128xf32> -> vector<16x128xf32>
    %c0_3 = arith.constant 0 : index
    %c0_4 = arith.constant 0 : index
    %4 = vector.load %arg3[%c0_3, %c0_4] : memref<1x128xf32, #tpu.memory_space<vmem>>, vector<1x128xf32>
    %5 = vector.broadcast %4 : vector<1x128xf32> to vector<16x128xf32>
    %6 = arith.addf %3, %5 : vector<16x128xf32>
    %cst_5 = arith.constant 0.000000e+00 : f32
    %7 = vector.broadcast %cst_5 : f32 to vector<16x128xf32>
    %8 = arith.maximumf %6, %7 : vector<16x128xf32>
    %9 = arith.truncf %8 : vector<16x128xf32> to vector<16x128xbf16>
    %c0_6 = arith.constant 0 : index
    %c0_7 = arith.constant 0 : index
    %10 = vector.load %arg4[%c0_6, %c0_7] : memref<128x128xbf16, #tpu.memory_space<vmem>>, vector<128x128xbf16>
    %cst_8 = arith.constant dense<0.000000e+00> : vector<16x128xf32>
    %11 = tpu.matmul %9, %10, %cst_8 {dimension_numbers = #tpu.dot_dimension_numbers<[1], [0], [0], [1], [0, 0, 1, 1], [], []>} : vector<16x128xbf16>, vector<128x128xbf16>, vector<16x128xf32> -> vector<16x128xf32>
    %c0_9 = arith.constant 0 : index
    %c0_10 = arith.constant 0 : index
    %12 = vector.load %arg5[%c0_9, %c0_10] : memref<1x128xf32, #tpu.memory_space<vmem>>, vector<1x128xf32>
    %13 = vector.broadcast %12 : vector<1x128xf32> to vector<16x128xf32>
    %14 = arith.addf %11, %13 : vector<16x128xf32>
    %cst_11 = arith.constant 0.000000e+00 : f32
    %15 = vector.broadcast %cst_11 : f32 to vector<16x128xf32>
    %16 = arith.maximumf %14, %15 : vector<16x128xf32>
    %17 = arith.truncf %16 : vector<16x128xf32> to vector<16x128xbf16>
    %c0_12 = arith.constant 0 : index
    %c0_13 = arith.constant 0 : index
    %18 = vector.load %arg6[%c0_12, %c0_13] : memref<128x128xbf16, #tpu.memory_space<vmem>>, vector<128x128xbf16>
    %cst_14 = arith.constant dense<0.000000e+00> : vector<16x128xf32>
    %19 = tpu.matmul %17, %18, %cst_14 {dimension_numbers = #tpu.dot_dimension_numbers<[1], [0], [0], [1], [0, 0, 1, 1], [], []>} : vector<16x128xbf16>, vector<128x128xbf16>, vector<16x128xf32> -> vector<16x128xf32>
    %c0_15 = arith.constant 0 : index
    %c0_16 = arith.constant 0 : index
    %20 = vector.load %arg7[%c0_15, %c0_16] : memref<1x128xf32, #tpu.memory_space<vmem>>, vector<1x128xf32>
    %21 = vector.broadcast %20 : vector<1x128xf32> to vector<16x128xf32>
    %22 = arith.addf %19, %21 : vector<16x128xf32>
    %23 = arith.truncf %22 : vector<16x128xf32> to vector<16x128xbf16>
    %c0_17 = arith.constant 0 : index
    %c0_18 = arith.constant 0 : index
    %24 = vector.load %arg8[%c0_17, %c0_18] : memref<16x128xbf16, #tpu.memory_space<vmem>>, vector<16x128xbf16>
    tpu.vector_store %arg8[%c0_17, %c0_18], %23 {strides = array<i32>} : memref<16x128xbf16, #tpu.memory_space<vmem>>, vector<16x128xbf16>,
    return
  }
  func.func @transform_0(%arg0: i32) -> (i32, i32) {
    %c0_i32 = arith.constant 0 : i32
    %c0_i32_0 = arith.constant 0 : i32
    return %arg0, %c0_i32 : i32, i32
  }
  func.func @transform_1(%arg0: i32) -> (i32, i32) {
    %c0_i32 = arith.constant 0 : i32
    %c0_i32_0 = arith.constant 0 : i32
    %c0_i32_1 = arith.constant 0 : i32
    return %c0_i32, %c0_i32_0 : i32, i32
  }
  func.func @transform_2(%arg0: i32) -> (i32, i32) {
    %c0_i32 = arith.constant 0 : i32
    %c0_i32_0 = arith.constant 0 : i32
    %c0_i32_1 = arith.constant 0 : i32
    return %c0_i32, %c0_i32_0 : i32, i32
  }
  func.func @transform_3(%arg0: i32) -> (i32, i32) {
    %c0_i32 = arith.constant 0 : i32
    %c0_i32_0 = arith.constant 0 : i32
    %c0_i32_1 = arith.constant 0 : i32
    return %c0_i32, %c0_i32_0 : i32, i32
  }
  func.func @transform_4(%arg0: i32) -> (i32, i32) {
    %c0_i32 = arith.constant 0 : i32
    %c0_i32_0 = arith.constant 0 : i32
    %c0_i32_1 = arith.constant 0 : i32
    return %c0_i32, %c0_i32_0 : i32, i32
  }
  func.func @transform_5(%arg0: i32) -> (i32, i32) {
    %c0_i32 = arith.constant 0 : i32
    %c0_i32_0 = arith.constant 0 : i32
    %c0_i32_1 = arith.constant 0 : i32
    return %c0_i32, %c0_i32_0 : i32, i32
  }
  func.func @transform_6(%arg0: i32) -> (i32, i32) {
    %c0_i32 = arith.constant 0 : i32
    %c0_i32_0 = arith.constant 0 : i32
    %c0_i32_1 = arith.constant 0 : i32
    return %c0_i32, %c0_i32_0 : i32, i32
  }
  func.func @transform_7(%arg0: i32) -> (i32, i32) {
    %c0_i32 = arith.constant 0 : i32
    %c0_i32_0 = arith.constant 0 : i32
    return %arg0, %c0_i32 : i32, i32
  }
}

module attributes {stable_mosaic.version = 11 : i64} {
  func.func @autoencoder_kernel(%arg0: i32, %arg1: memref<16x128xf32, #tpu.memory_space<vmem>>, %arg2: memref<128x128xbf16, #tpu.memory_space<vmem>>, %arg3: memref<1x128xf32, #tpu.memory_space<vmem>>, %arg4: memref<128x128xbf16, #tpu.memory_space<vmem>>, %arg5: memref<1x128xf32, #tpu.memory_space<vmem>>, %arg6: memref<128x128xbf16, #tpu.memory_space<vmem>>, %arg7: memref<1x128xf32, #tpu.memory_space<vmem>>, %arg8: memref<16x128xbf16, #tpu.memory_space<vmem>>) attributes {dimension_semantics = [#tpu.dimension_semantics<parallel>], iteration_bounds = array<i64: 1>, scalar_prefetch = 0 : i64, scratch_operands = 0 : i64, tpu.core_type = #tpu.core_type<tc>, window_params = [{transform_indices = @transform_0, window_bounds = array<i64: 16, 128>}, {pipeline_mode = #tpu.pipeline_mode<synchronous>, transform_indices = @transform_1, window_bounds = array<i64: 128, 128>}, {pipeline_mode = #tpu.pipeline_mode<synchronous>, transform_indices = @transform_2, window_bounds = array<i64: 1, 128>}, {pipeline_mode = #tpu.pipeline_mode<synchronous>, transform_indices = @transform_3, window_bounds = array<i64: 128, 128>}, {pipeline_mode = #tpu.pipeline_mode<synchronous>, transform_indices = @transform_4, window_bounds = array<i64: 1, 128>}, {pipeline_mode = #tpu.pipeline_mode<synchronous>, transform_indices = @transform_5, window_bounds = array<i64: 128, 128>}, {pipeline_mode = #tpu.pipeline_mode<synchronous>, transform_indices = @transform_6, window_bounds = array<i64: 1, 128>}, {transform_indices = @transform_7, window_bounds = array<i64: 16, 128>}]} {
    %c0 = arith.constant 0 : index
    %c0_0 = arith.constant 0 : index
    %0 = vector.load %arg1[%c0, %c0_0] : memref<16x128xf32, #tpu.memory_space<vmem>>, vector<16x128xf32>
    %1 = arith.truncf %0 : vector<16x128xf32> to vector<16x128xbf16>
    %c0_1 = arith.constant 0 : index
    %c0_2 = arith.constant 0 : index
    %2 = vector.load %arg2[%c0_1, %c0_2] : memref<128x128xbf16, #tpu.memory_space<vmem>>, vector<128x128xbf16>
    %cst = arith.constant dense<0.000000e+00> : vector<16x128xf32>
    %3 = tpu.matmul %1, %2, %cst {dimension_numbers = #tpu.dot_dimension_numbers<[1], [0], [0], [1], [0, 0, 1, 1], [], []>} : vector<16x128xbf16>, vector<128x128xbf16>, vector<16x128xf32> -> vector<16x128xf32>
    %c0_3 = arith.constant 0 : index
    %c0_4 = arith.constant 0 : index
    %4 = vector.load %arg3[%c0_3, %c0_4] : memref<1x128xf32, #tpu.memory_space<vmem>>, vector<1x128xf32>
    %5 = vector.broadcast %4 : vector<1x128xf32> to vector<16x128xf32>
    %6 = arith.addf %3, %5 : vector<16x128xf32>
    %cst_5 = arith.constant 0.000000e+00 : f32
    %7 = vector.broadcast %cst_5 : f32 to vector<16x128xf32>
    %8 = arith.maximumf %6, %7 : vector<16x128xf32>
    %9 = arith.truncf %8 : vector<16x128xf32> to vector<16x128xbf16>
    %c0_6 = arith.constant 0 : index
    %c0_7 = arith.constant 0 : index
    %10 = vector.load %arg4[%c0_6, %c0_7] : memref<128x128xbf16, #tpu.memory_space<vmem>>, vector<128x128xbf16>
    %cst_8 = arith.constant dense<0.000000e+00> : vector<16x128xf32>
    %11 = tpu.matmul %9, %10, %cst_8 {dimension_numbers = #tpu.dot_dimension_numbers<[1], [0], [0], [1], [0, 0, 1, 1], [], []>} : vector<16x128xbf16>, vector<128x128xbf16>, vector<16x128xf32> -> vector<16x128xf32>
    %c0_9 = arith.constant 0 : index
    %c0_10 = arith.constant 0 : index
    %12 = vector.load %arg5[%c0_9, %c0_10] : memref<1x128xf32, #tpu.memory_space<vmem>>, vector<1x128xf32>
    %13 = vector.broadcast %12 : vector<1x128xf32> to vector<16x128xf32>
    %14 = arith.addf %11, %13 : vector<16x128xf32>
    %cst_11 = arith.constant 0.000000e+00 : f32
    %15 = vector.broadcast %cst_11 : f32 to vector<16x128xf32>
    %16 = arith.maximumf %14, %15 : vector<16x128xf32>
    %17 = arith.truncf %16 : vector<16x128xf32> to vector<16x128xbf16>
    %c0_12 = arith.constant 0 : index
    %c0_13 = arith.constant 0 : index
    %18 = vector.load %arg6[%c0_12, %c0_13] : memref<128x128xbf16, #tpu.memory_space<vmem>>, vector<128x128xbf16>
    %cst_14 = arith.constant dense<0.000000e+00> : vector<16x128xf32>
    %19 = tpu.matmul %17, %18, %cst_14 {dimension_numbers = #tpu.dot_dimension_numbers<[1], [0], [0], [1], [0, 0, 1, 1], [], []>} : vector<16x128xbf16>, vector<128x128xbf16>, vector<16x128xf32> -> vector<16x128xf32>
    %c0_15 = arith.constant 0 : index
    %c0_16 = arith.constant 0 : index
    %20 = vector.load %arg7[%c0_15, %c0_16] : memref<1x128xf32, #tpu.memory_space<vmem>>, vector<1x128xf32>
    %21 = vector.broadcast %20 : vector<1x128xf32> to vector<16x128xf32>
    %22 = arith.addf %19, %21 : vector<16x128xf32>
    %23 = arith.truncf %22 : vector<16x128xf32> to vector<16x128xbf16>
    %c0_17 = arith.constant 0 : index
    %c0_18 = arith.constant 0 : index
    %24 = vector.load %arg8[%c0_17, %c0_18] : memref<16x128xbf16, #tpu.memory_space<vmem>>, vector<16x128xbf16>
    tpu.vector_store %arg8[%c0_17, %c0_18], %23 {strides = array<i32>} : memref<16x128xbf16, #tpu.memory_space<vmem>>, vector<16x128xbf16>,
    return
  }
  func.func @transform_0(%arg0: i32) -> (i32, i32) {
    %c0_i32 = arith.constant 0 : i32
    %c0_i32_0 = arith.constant 0 : i32
    return %arg0, %c0_i32 : i32, i32
  }
  func.func @transform_1(%arg0: i32) -> (i32, i32) {
    %c0_i32 = arith.constant 0 : i32
    %c0_i32_0 = arith.constant 0 : i32
    %c0_i32_1 = arith.constant 0 : i32
    return %c0_i32, %c0_i32_0 : i32, i32
  }
  func.func @transform_2(%arg0: i32) -> (i32, i32) {
    %c0_i32 = arith.constant 0 : i32
    %c0_i32_0 = arith.constant 0 : i32
    %c0_i32_1 = arith.constant 0 : i32
    return %c0_i32, %c0_i32_0 : i32, i32
  }
  func.func @transform_3(%arg0: i32) -> (i32, i32) {
    %c0_i32 = arith.constant 0 : i32
    %c0_i32_0 = arith.constant 0 : i32
    %c0_i32_1 = arith.constant 0 : i32
    return %c0_i32, %c0_i32_0 : i32, i32
  }
  func.func @transform_4(%arg0: i32) -> (i32, i32) {
    %c0_i32 = arith.constant 0 : i32
    %c0_i32_0 = arith.constant 0 : i32
    %c0_i32_1 = arith.constant 0 : i32
    return %c0_i32, %c0_i32_0 : i32, i32
  }
  func.func @transform_5(%arg0: i32) -> (i32, i32) {
    %c0_i32 = arith.constant 0 : i32
    %c0_i32_0 = arith.constant 0 : i32
    %c0_i32_1 = arith.constant 0 : i32
    return %c0_i32, %c0_i32_0 : i32, i32
  }
  func.func @transform_6(%arg0: i32) -> (i32, i32) {
    %c0_i32 = arith.constant 0 : i32
    %c0_i32_0 = arith.constant 0 : i32
    %c0_i32_1 = arith.constant 0 : i32
    return %c0_i32, %c0_i32_0 : i32, i32
  }
  func.func @transform_7(%arg0: i32) -> (i32, i32) {
    %c0_i32 = arith.constant 0 : i32
    %c0_i32_0 = arith.constant 0 : i32
    return %arg0, %c0_i32 : i32, i32
  }
}

</mosaic_0001>

<bundles_post_ra>
// kernel: tpu_custom_call.1
= control target key start
LH: loop header
LB: loop body
LE: loop exit
PB: predicated region body
PF: predicated region fallthrough
CT: control target
= control target key end

     0   :  { %12 = vsyncpa [#allocation3], 0  ;;  %s902_s0 = inlined_call_operand.hbm [shape: f32[16,128], index: 0, kind: input, shape index: {}]   ;;  %s903_s1 = inlined_call_operand.hbm [shape: bf16[128,128], index: 1, kind: input, shape index: {}]   ;;  %s904_s2 = inlined_call_operand.vmem [shape: f32[1,128], index: 2, kind: input, shape index: {}]   ;;  %s905_s3 = inlined_call_operand.hbm [shape: bf16[128,128], index: 3, kind: input, shape index: {}]   ;;  %s906_s4 = inlined_call_operand.vmem [shape: f32[1,128], index: 4, kind: input, shape index: {}]   ;;  %s907_s5 = inlined_call_operand.hbm [shape: bf16[128,128], index: 5, kind: input, shape index: {}]   ;;  %s908_s6 = inlined_call_operand.vmem [shape: f32[1,128], index: 6, kind: input, shape index: {}]   ;;  %s909_s7 = inlined_call_operand.hbm [shape: bf16[16,128], index: 7, kind: output, shape index: {}]  }
   0x1   :  { %13 = vsyncpa [#allocation6], 0 }
   0x2   :  { %14 = vsyncpa [#allocation9], 0 }
   0x3   :  { %15 = vsyncpa [#allocation4], 0  ;;  %s733_s24 = smov [#allocation5]   ;;  %s615_s28 = scalar_lea.hbm %s903_s1, 1024 }
   0x4   :  { %s33_s25 = sshll.u32 %s733_s24, 4  ;;  %p616_p0 = scmp.ne.s32.totalorder %s903_s1, %s615_s28  ;;  %s34_s25 = int_to_ptr.vmem [resolvable:$true] %s33_s25 }
   0x5   :  { %p619_p1 = scmp.lt.u32.totalorder %s615_s28, %s903_s1 }
   0x7   :  { %p621_p2 = pnand %p619_p1, %p616_p0 }
   0x9   :  { %624 = shalt.err (!%p621_p2)
}
   0xa   :  { %s625_s10 = scalar_lea.vmem %s34_s25, 1024  ;;  %p630_p4 = scmp.lt.s32.totalorder %s34_s25, %s34_s25 }
   0xb   :  { %p626_p3 = scmp.ne.s32.totalorder %s34_s25, %s625_s10  ;;  %p631_p5 = scmp.lt.s32.totalorder %s625_s10, %s625_s10 }
   0xd   :  { %p632_p6 = por %p631_p5, %p630_p4 }
   0xf   :  { %p633_p7 = pnand %p632_p6, %p626_p3 }
  0x11   :  { %636 = shalt.err (!%p633_p7)
}
  0x12   :  { %s734_s11 = smov 64   ;;  %s735_s12 = smov 4  }
  0x13   :  { %39 = dma.hbm_to_vmem [thread:$0]  %s903_s1, 1024, %s34_s25, [#allocation6], %s734_s11, %s734_s11, %s735_s12  }
  0x14   :  { %s736_s15 = smov [#allocation2]   ;;  %s637_s19 = scalar_lea.hbm %s902_s0, 256 }
  0x15   :  { %s21_s16 = sshll.u32 %s736_s15, 4  ;;  %p638_p8 = scmp.ne.s32.totalorder %s902_s0, %s637_s19  ;;  %s22_s16 = int_to_ptr.vmem [resolvable:$true] %s21_s16 }
  0x16   :  { %p641_p9 = scmp.lt.u32.totalorder %s637_s19, %s902_s0 }
  0x18   :  { %p643_p10 = pnand %p641_p9, %p638_p8 }
  0x1a   :  { %646 = shalt.err (!%p643_p10)
}
  0x1b   :  { %s647_s24 = scalar_lea.vmem %s22_s16, 256  ;;  %p652_p12 = scmp.lt.s32.totalorder %s22_s16, %s22_s16 }
  0x1c   :  { %p648_p11 = scmp.ne.s32.totalorder %s22_s16, %s647_s24  ;;  %p653_p13 = scmp.lt.s32.totalorder %s647_s24, %s647_s24 }
  0x1e   :  { %p654_p0 = por %p653_p13, %p652_p12 }
  0x20   :  { %p655_p1 = pnand %p654_p0, %p648_p11 }
  0x22   :  { %658 = shalt.err (!%p655_p1)
}
  0x23   :  { %s737_s1 = smov 128   ;;  %s738_s25 = smov 8  }
  0x24   :  { %27 = dma.hbm_to_vmem [thread:$0]  %s902_s0, 256, %s22_s16, [#allocation3], %s737_s1, %s737_s1, %s738_s25  }
  0x25   :  { %s739_s28 = smov [#allocation7]   ;;  %s740_s30 = smov [#allocation8]  }
  0x26   :  { %s47_s29 = sshll.u32 %s739_s28, 4  ;;  %s61_s8 = sshll.u32 %s740_s30, 4  ;;  %s48_s29 = int_to_ptr.vmem [resolvable:$true] %s47_s29  ;;  %s811_s8 = int_to_ptr.vmem [resolvable:$true] %s61_s8 }
  0x27   :  { %s659_s13 = scalar_lea.hbm %s905_s3, 1024 }
  0x28   :  { %p660_p2 = scmp.ne.s32.totalorder %s905_s3, %s659_s13  ;;  %p663_p3 = scmp.lt.u32.totalorder %s659_s13, %s905_s3 }
  0x2a   :  { %p665_p4 = pnand %p663_p3, %p660_p2 }
  0x2c   :  { %668 = shalt.err (!%p665_p4)
}
  0x2d   :  { %s669_s0 = scalar_lea.vmem %s48_s29, 1024  ;;  %p674_p6 = scmp.lt.s32.totalorder %s48_s29, %s48_s29 }
  0x2e   :  { %p670_p5 = scmp.ne.s32.totalorder %s48_s29, %s669_s0  ;;  %p675_p7 = scmp.lt.s32.totalorder %s669_s0, %s669_s0 }
  0x30   :  { %p676_p8 = por %p675_p7, %p674_p6 }
  0x32   :  { %p677_p9 = pnand %p676_p8, %p670_p5 }
  0x34   :  { %680 = shalt.err (!%p677_p9)
}
  0x35   :  { %53 = dma.hbm_to_vmem [thread:$0]  %s905_s3, 1024, %s48_s29, [#allocation6], %s734_s11, %s734_s11, %s735_s12  }
  0x36   :  { %s681_s22 = scalar_lea.hbm %s907_s5, 1024 }
  0x37   :  { %p682_p10 = scmp.ne.s32.totalorder %s907_s5, %s681_s22  ;;  %p685_p11 = scmp.lt.u32.totalorder %s681_s22, %s907_s5 }
  0x39   :  { %p687_p12 = pnand %p685_p11, %p682_p10 }
  0x3b   :  { %690 = shalt.err (!%p687_p12)
}
  0x3c   :  { %s691_s26 = scalar_lea.vmem %s811_s8, 1024  ;;  %p696_p0 = scmp.lt.s32.totalorder %s811_s8, %s811_s8 }
  0x3d   :  { %p692_p13 = scmp.ne.s32.totalorder %s811_s8, %s691_s26  ;;  %p697_p1 = scmp.lt.s32.totalorder %s691_s26, %s691_s26 }
  0x3f   :  { %p698_p2 = por %p697_p1, %p696_p0 }
  0x41   :  { %p699_p3 = pnand %p698_p2, %p692_p13 }
  0x43   :  { %702 = shalt.err (!%p699_p3)
}
  0x44   :  { %67 = dma.hbm_to_vmem [thread:$0]  %s907_s5, 1024, %s811_s8, [#allocation9], %s734_s11, %s734_s11, %s735_s12  }
  0x45   :  { %725 = dma.done.wait [#allocation3], 256  }
  0x46   :  { %726 = vsyncadd [#allocation3], 4294967040 }
  0x47   :  { %727 = dma.done.wait [#allocation6], 2048  }
  0x48   :  { %728 = vsyncadd [#allocation6], 4294965248 }
  0x49   :  { %729 = dma.done.wait [#allocation9], 1024  }
  0x4a   :  { %730 = vsyncadd [#allocation9], 4294966272  ;;  %v741_v0 = vmov 0.0   ;;  %vm742_vm0 = vmmov 0   ;;  %v591_v1 = vld [vmem:[#allocation5] sm:$0xff]   ;;  %v592_v2 = vld [vmem:[#allocation5 + $0x8] sm:$0xff]  }
  0x4b   :  { %520 = vmatprep.subr.bf16.mxu0 %v741_v0  ;;  %536 = vmatprep.mubr.msk.bf16.mxu0 %vm742_vm0, %v741_v0  ;;  %v593_v3 = vld [vmem:[#allocation5 + $0x10] sm:$0xff]   ;;  %v599_v4 = vld [vmem:[#allocation7] sm:$0xff]   ;;  %v594_v5 = vld [vmem:[#allocation5 + $0x18] sm:$0xff]   ;;  %s743_s9 = smov [#allocation10]  }
  0x4c   :  { %540 = vmatprep.subr.bf16.mxu1 %v741_v0  ;;  %556 = vmatprep.mubr.msk.bf16.mxu1 %vm742_vm0, %v741_v0  ;;  %v600_v6 = vld [vmem:[#allocation7 + $0x8] sm:$0xff]   ;;  %v595_v7 = vld [vmem:[#allocation5 + $0x20] sm:$0xff]   ;;  %v601_v8 = vld [vmem:[#allocation7 + $0x10] sm:$0xff]   ;;  %s443_s10 = sshll.u32 %s743_s9, 4  ;;  %s444_s10 = int_to_ptr.vmem [resolvable:$true] %s443_s10 }
  0x4d   :  { %521 = vmatpush3.bf16.msra.mxu0 %v591_v1  ;;  %541 = vmatpush3.bf16.msra.mxu1 %v599_v4  ;;  %v596_v9 = vld [vmem:[#allocation5 + $0x28] sm:$0xff]   ;;  %v602_v10 = vld [vmem:[#allocation7 + $0x18] sm:$0xff]   ;;  %v597_v11 = vld [vmem:[#allocation5 + $0x30] sm:$0xff]   ;;  %p708_p5 = scmp.lt.s32.totalorder %s444_s10, %s444_s10 }
  0x4e   :  { %522 = vmatprep.subr.bf16.mxu0 %v741_v0  ;;  %542 = vmatprep.subr.bf16.mxu1 %v741_v0  ;;  %v603_v12 = vld [vmem:[#allocation7 + $0x20] sm:$0xff]   ;;  %v598_v13 = vld [vmem:[#allocation5 + $0x38] sm:$0xff]   ;;  %v83_v14 = vld [vmem:[#allocation2] sm:$0xff] }
  0x4f   :  { %v84_v15 = vld [vmem:[#allocation2 + $0x8] sm:$0xff]  ;;  %v604_v16 = vld [vmem:[#allocation7 + $0x28] sm:$0xff]   ;;  %v605_v18 = vld [vmem:[#allocation7 + $0x30] sm:$0xff]  }
  0x50   :  { %v85_v17 = vpack.c.bf16 %v84_v15, %v83_v14  ;;  %v606_v19 = vld [vmem:[#allocation7 + $0x38] sm:$0xff]   ;;  %v607_v20 = vld [vmem:[#allocation8] sm:$0xff]   ;;  %v608_v21 = vld [vmem:[#allocation8 + $0x8] sm:$0xff]  }
  0x51   :  { %523 = vmatpush3.bf16.msra.mxu0 %v592_v2  ;;  %543 = vmatpush3.bf16.msra.mxu1 %v600_v6  ;;  %v609_v22 = vld [vmem:[#allocation8 + $0x10] sm:$0xff]   ;;  %v610_v23 = vld [vmem:[#allocation8 + $0x18] sm:$0xff]   ;;  %v611_v24 = vld [vmem:[#allocation8 + $0x20] sm:$0xff]  }
  0x52   :  { %524 = vmatprep.subr.bf16.mxu0 %v741_v0  ;;  %544 = vmatprep.subr.bf16.mxu1 %v741_v0  ;;  %v612_v25 = vld [vmem:[#allocation8 + $0x28] sm:$0xff]   ;;  %v457_v26 = vld [vmem:[%s904_s2] ss:$0 sm:$0xff]  ;;  %v614_v37 = vld [vmem:[#allocation8 + $0x38] sm:$0xff]  }
  0x53   :  { %v613_v36 = vld [vmem:[#allocation8 + $0x30] sm:$0xff]  }
  0x54   :  { %v466_v38 = vld [vmem:[%s906_s4] ss:$0 sm:$0xff]  ;;  %s703_s4 = scalar_lea.vmem %s444_s10, 128 }
  0x55   :  { %525 = vmatpush3.bf16.msra.mxu0 %v593_v3  ;;  %545 = vmatpush3.bf16.msra.mxu1 %v601_v8  ;;  %v475_v48 = vld [vmem:[%s908_s6] ss:$0 sm:$0xff]  ;;  %p704_p4 = scmp.ne.s32.totalorder %s444_s10, %s703_s4  ;;  %p709_p6 = scmp.lt.s32.totalorder %s703_s4, %s703_s4 }
  0x56   :  { %526 = vmatprep.subr.bf16.mxu0 %v741_v0  ;;  %546 = vmatprep.subr.bf16.mxu1 %v741_v0 }
  0x57   :  { %p710_p7 = por %p709_p6, %p708_p5 }
  0x59   :  { %527 = vmatpush3.bf16.msra.mxu0 %v594_v5  ;;  %547 = vmatpush3.bf16.msra.mxu1 %v602_v10  ;;  %p711_p8 = pnand %p710_p7, %p704_p4 }
  0x5a   :  { %528 = vmatprep.subr.bf16.mxu0 %v741_v0  ;;  %548 = vmatprep.subr.bf16.mxu1 %v741_v0 }
  0x5d   :  { %529 = vmatpush3.bf16.msra.mxu0 %v595_v7  ;;  %549 = vmatpush3.bf16.msra.mxu1 %v603_v12 }
  0x5e   :  { %530 = vmatprep.subr.bf16.mxu0 %v741_v0  ;;  %550 = vmatprep.subr.bf16.mxu1 %v741_v0 }
  0x61   :  { %531 = vmatpush3.bf16.msra.mxu0 %v596_v9  ;;  %551 = vmatpush3.bf16.msra.mxu1 %v604_v16 }
  0x62   :  { %532 = vmatprep.subr.bf16.mxu0 %v741_v0  ;;  %552 = vmatprep.subr.bf16.mxu1 %v741_v0 }
  0x65   :  { %533 = vmatpush3.bf16.msra.mxu0 %v597_v11  ;;  %553 = vmatpush3.bf16.msra.mxu1 %v605_v18 }
  0x66   :  { %534 = vmatprep.subr.bf16.mxu0 %v741_v0  ;;  %554 = vmatprep.subr.bf16.mxu1 %v741_v0 }
  0x69   :  { %535 = vmatpush3.bf16.msra.mxu0 %v598_v13  ;;  %555 = vmatpush3.bf16.msra.mxu1 %v606_v19 }
  0x6a   :  { %560 = vmatprep.subr.bf16.mxu0 %v741_v0 }
  0x6c   :  { %537 = vmatmul.mubr.bf16.vlgmr.msra.gmra.mrb[0].mxu0 %v85_v17 }
  0x6d   :  { %576 = vmatprep.mubr.msk.bf16.mxu0 %vm742_vm0, %v741_v0  ;;  %561 = vmatpush3.bf16.msra.mxu0 %v607_v20 }
  0x6e   :  { %562 = vmatprep.subr.bf16.mxu0 %v741_v0 }
  0x71   :  { %563 = vmatpush3.bf16.msra.mxu0 %v608_v21 }
  0x72   :  { %564 = vmatprep.subr.bf16.mxu0 %v741_v0 }
  0x75   :  { %565 = vmatpush3.bf16.msra.mxu0 %v609_v22 }
  0x76   :  { %566 = vmatprep.subr.bf16.mxu0 %v741_v0 }
  0x79   :  { %567 = vmatpush3.bf16.msra.mxu0 %v610_v23 }
  0x7a   :  { %568 = vmatprep.subr.bf16.mxu0 %v741_v0 }
  0x7d   :  { %569 = vmatpush3.bf16.msra.mxu0 %v611_v24 }
  0x7e   :  { %570 = vmatprep.subr.bf16.mxu0 %v741_v0 }
  0x81   :  { %571 = vmatpush3.bf16.msra.mxu0 %v612_v25 }
  0x82   :  { %572 = vmatprep.subr.bf16.mxu0 %v741_v0 }
  0x85   :  { %573 = vmatpush3.bf16.msra.mxu0 %v613_v36 }
  0x86   :  { %574 = vmatprep.subr.bf16.mxu0 %v741_v0 }
  0x89   :  { %575 = vmatpush3.bf16.msra.mxu0 %v614_v37 }
 0x13f   :  { %v191_v27 = vpop.f32.mrb[0].mxu0 }
 0x140   :  { %v192_v28 = vadd.f32 %v457_v26, %v191_v27  ;;  %v538_v29 = vpop.f32.mrb[1].mxu0 }
 0x141   :  { %v194_v30 = vpop.f32.mrb[2].mxu0 }
 0x142   :  { %v195_v31 = vadd.f32 %v457_v26, %v194_v30  ;;  %v539_v32 = vpop.f32.mrb[3].mxu0  ;;  %v198_v33 = vmax.f32 %v192_v28, 0.0 }
 0x144   :  { %v199_v34 = vmax.f32 %v195_v31, 0.0 }
 0x146   :  { %v200_v35 = vpack.c.bf16 %v199_v34, %v198_v33 }
 0x148   :  { %557 = vmatmul.mubr.bf16.vlgmr.msra.gmra.mrb[0].mxu1 %v200_v35 }
 0x21b   :  { %v306_v39 = vpop.f32.mrb[0].mxu1 }
 0x21c   :  { %v307_v40 = vadd.f32 %v466_v38, %v306_v39  ;;  %v558_v41 = vpop.f32.mrb[1].mxu1 }
 0x21d   :  { %v309_v42 = vpop.f32.mrb[2].mxu1 }
 0x21e   :  { %v310_v43 = vadd.f32 %v466_v38, %v309_v42  ;;  %v559_v44 = vpop.f32.mrb[3].mxu1  ;;  %v313_v45 = vmax.f32 %v307_v40, 0.0 }
 0x220   :  { %v314_v46 = vmax.f32 %v310_v43, 0.0 }
 0x222   :  { %v315_v47 = vpack.c.bf16 %v314_v46, %v313_v45 }
 0x224   :  { %577 = vmatmul.mubr.bf16.vlgmr.msra.gmra.mrb[4].mxu0 %v315_v47 }
 0x2f7   :  { %v421_v49 = vpop.f32.mrb[4].mxu0 }
 0x2f8   :  { %v578_v50 = vpop.f32.mrb[5].mxu0  ;;  %v422_v52 = vadd.f32 %v475_v48, %v421_v49 }
 0x2f9   :  { %v424_v51 = vpop.f32.mrb[6].mxu0 }
 0x2fa   :  { %v425_v53 = vadd.f32 %v475_v48, %v424_v51  ;;  %v579_v54 = vpop.f32.mrb[7].mxu0 }
 0x2fc   :  { %v491_v55 = vpack.c.bf16 %v425_v53, %v422_v52 }
 0x2fe   :  { %492 = vst [vmem:[#allocation10] sm:$0xff] %v491_v55  }
 0x2ff   :  { %714 = shalt.err (!%p711_p8)
}
 0x300   :  { %s715_s14 = scalar_lea.hbm %s909_s7, 128 }
 0x301   :  { %p716_p9 = scmp.ne.s32.totalorder %s909_s7, %s715_s14  ;;  %p719_p10 = scmp.lt.u32.totalorder %s715_s14, %s909_s7 }
 0x303   :  { %p721_p11 = pnand %p719_p10, %p716_p9 }
 0x305   :  { %724 = shalt.err (!%p721_p11)
}
 0x306   :  { %449 = dma.vmem_to_hbm [thread:$0]  %s444_s10, 128, %s909_s7, [#allocation4], %s734_s11, %s734_s11, %s735_s12  }
 0x307   :  { %731 = dma.done.wait [#allocation4], 128  }
 0x308   :  { %732 = vsyncadd [#allocation4], 4294967168 }
 0x309   :  { %453 = vsyncpa [#allocation3], 1 }
 0x30a   :  { %454 = vsyncpa [#allocation6], 1 }
 0x30b   :  { %455 = vsyncpa [#allocation9], 1 }
 0x30c   :  { %456 = vsyncpa [#allocation4], 1 }

// kernel: tpu_custom_call.1
= control target key start
LH: loop header
LB: loop body
LE: loop exit
PB: predicated region body
PF: predicated region fallthrough
CT: control target
= control target key end

     0   :  { %12 = vsyncpa [#allocation3], 0  ;;  %s902_s0 = inlined_call_operand.hbm [shape: f32[16,128], index: 0, kind: input, shape index: {}]   ;;  %s903_s1 = inlined_call_operand.hbm [shape: bf16[128,128], index: 1, kind: input, shape index: {}]   ;;  %s904_s2 = inlined_call_operand.vmem [shape: f32[1,128], index: 2, kind: input, shape index: {}]   ;;  %s905_s3 = inlined_call_operand.hbm [shape: bf16[128,128], index: 3, kind: input, shape index: {}]   ;;  %s906_s4 = inlined_call_operand.vmem [shape: f32[1,128], index: 4, kind: input, shape index: {}]   ;;  %s907_s5 = inlined_call_operand.hbm [shape: bf16[128,128], index: 5, kind: input, shape index: {}]   ;;  %s908_s6 = inlined_call_operand.vmem [shape: f32[1,128], index: 6, kind: input, shape index: {}]   ;;  %s909_s7 = inlined_call_operand.hbm [shape: bf16[16,128], index: 7, kind: output, shape index: {}]  }
   0x1   :  { %13 = vsyncpa [#allocation6], 0 }
   0x2   :  { %14 = vsyncpa [#allocation9], 0 }
   0x3   :  { %15 = vsyncpa [#allocation4], 0  ;;  %s733_s24 = smov [#allocation5]   ;;  %s615_s28 = scalar_lea.hbm %s903_s1, 1024 }
   0x4   :  { %s33_s25 = sshll.u32 %s733_s24, 4  ;;  %p616_p0 = scmp.ne.s32.totalorder %s903_s1, %s615_s28  ;;  %s34_s25 = int_to_ptr.vmem [resolvable:$true] %s33_s25 }
   0x5   :  { %p619_p1 = scmp.lt.u32.totalorder %s615_s28, %s903_s1 }
   0x7   :  { %p621_p2 = pnand %p619_p1, %p616_p0 }
   0x9   :  { %624 = shalt.err (!%p621_p2)
}
   0xa   :  { %s625_s10 = scalar_lea.vmem %s34_s25, 1024  ;;  %p630_p4 = scmp.lt.s32.totalorder %s34_s25, %s34_s25 }
   0xb   :  { %p626_p3 = scmp.ne.s32.totalorder %s34_s25, %s625_s10  ;;  %p631_p5 = scmp.lt.s32.totalorder %s625_s10, %s625_s10 }
   0xd   :  { %p632_p6 = por %p631_p5, %p630_p4 }
   0xf   :  { %p633_p7 = pnand %p632_p6, %p626_p3 }
  0x11   :  { %636 = shalt.err (!%p633_p7)
}
  0x12   :  { %s734_s11 = smov 64   ;;  %s735_s12 = smov 4  }
  0x13   :  { %39 = dma.hbm_to_vmem [thread:$0]  %s903_s1, 1024, %s34_s25, [#allocation6], %s734_s11, %s734_s11, %s735_s12  }
  0x14   :  { %s736_s15 = smov [#allocation2]   ;;  %s637_s19 = scalar_lea.hbm %s902_s0, 256 }
  0x15   :  { %s21_s16 = sshll.u32 %s736_s15, 4  ;;  %p638_p8 = scmp.ne.s32.totalorder %s902_s0, %s637_s19  ;;  %s22_s16 = int_to_ptr.vmem [resolvable:$true] %s21_s16 }
  0x16   :  { %p641_p9 = scmp.lt.u32.totalorder %s637_s19, %s902_s0 }
  0x18   :  { %p643_p10 = pnand %p641_p9, %p638_p8 }
  0x1a   :  { %646 = shalt.err (!%p643_p10)
}
  0x1b   :  { %s647_s24 = scalar_lea.vmem %s22_s16, 256  ;;  %p652_p12 = scmp.lt.s32.totalorder %s22_s16, %s22_s16 }
  0x1c   :  { %p648_p11 = scmp.ne.s32.totalorder %s22_s16, %s647_s24  ;;  %p653_p13 = scmp.lt.s32.totalorder %s647_s24, %s647_s24 }
  0x1e   :  { %p654_p0 = por %p653_p13, %p652_p12 }
  0x20   :  { %p655_p1 = pnand %p654_p0, %p648_p11 }
  0x22   :  { %658 = shalt.err (!%p655_p1)
}
  0x23   :  { %s737_s1 = smov 128   ;;  %s738_s25 = smov 8  }
  0x24   :  { %27 = dma.hbm_to_vmem [thread:$0]  %s902_s0, 256, %s22_s16, [#allocation3], %s737_s1, %s737_s1, %s738_s25  }
  0x25   :  { %s739_s28 = smov [#allocation7]   ;;  %s740_s30 = smov [#allocation8]  }
  0x26   :  { %s47_s29 = sshll.u32 %s739_s28, 4  ;;  %s61_s8 = sshll.u32 %s740_s30, 4  ;;  %s48_s29 = int_to_ptr.vmem [resolvable:$true] %s47_s29  ;;  %s811_s8 = int_to_ptr.vmem [resolvable:$true] %s61_s8 }
  0x27   :  { %s659_s13 = scalar_lea.hbm %s905_s3, 1024 }
  0x28   :  { %p660_p2 = scmp.ne.s32.totalorder %s905_s3, %s659_s13  ;;  %p663_p3 = scmp.lt.u32.totalorder %s659_s13, %s905_s3 }
  0x2a   :  { %p665_p4 = pnand %p663_p3, %p660_p2 }
  0x2c   :  { %668 = shalt.err (!%p665_p4)
}
  0x2d   :  { %s669_s0 = scalar_lea.vmem %s48_s29, 1024  ;;  %p674_p6 = scmp.lt.s32.totalorder %s48_s29, %s48_s29 }
  0x2e   :  { %p670_p5 = scmp.ne.s32.totalorder %s48_s29, %s669_s0  ;;  %p675_p7 = scmp.lt.s32.totalorder %s669_s0, %s669_s0 }
  0x30   :  { %p676_p8 = por %p675_p7, %p674_p6 }
  0x32   :  { %p677_p9 = pnand %p676_p8, %p670_p5 }
  0x34   :  { %680 = shalt.err (!%p677_p9)
}
  0x35   :  { %53 = dma.hbm_to_vmem [thread:$0]  %s905_s3, 1024, %s48_s29, [#allocation6], %s734_s11, %s734_s11, %s735_s12  }
  0x36   :  { %s681_s22 = scalar_lea.hbm %s907_s5, 1024 }
  0x37   :  { %p682_p10 = scmp.ne.s32.totalorder %s907_s5, %s681_s22  ;;  %p685_p11 = scmp.lt.u32.totalorder %s681_s22, %s907_s5 }
  0x39   :  { %p687_p12 = pnand %p685_p11, %p682_p10 }
  0x3b   :  { %690 = shalt.err (!%p687_p12)
}
  0x3c   :  { %s691_s26 = scalar_lea.vmem %s811_s8, 1024  ;;  %p696_p0 = scmp.lt.s32.totalorder %s811_s8, %s811_s8 }
  0x3d   :  { %p692_p13 = scmp.ne.s32.totalorder %s811_s8, %s691_s26  ;;  %p697_p1 = scmp.lt.s32.totalorder %s691_s26, %s691_s26 }
  0x3f   :  { %p698_p2 = por %p697_p1, %p696_p0 }
  0x41   :  { %p699_p3 = pnand %p698_p2, %p692_p13 }
  0x43   :  { %702 = shalt.err (!%p699_p3)
}
  0x44   :  { %67 = dma.hbm_to_vmem [thread:$0]  %s907_s5, 1024, %s811_s8, [#allocation9], %s734_s11, %s734_s11, %s735_s12  }
  0x45   :  { %725 = dma.done.wait [#allocation3], 256  }
  0x46   :  { %726 = vsyncadd [#allocation3], 4294967040 }
  0x47   :  { %727 = dma.done.wait [#allocation6], 2048  }
  0x48   :  { %728 = vsyncadd [#allocation6], 4294965248 }
  0x49   :  { %729 = dma.done.wait [#allocation9], 1024  }
  0x4a   :  { %730 = vsyncadd [#allocation9], 4294966272  ;;  %v741_v0 = vmov 0.0   ;;  %vm742_vm0 = vmmov 0   ;;  %v591_v1 = vld [vmem:[#allocation5] sm:$0xff]   ;;  %v592_v2 = vld [vmem:[#allocation5 + $0x8] sm:$0xff]  }
  0x4b   :  { %520 = vmatprep.subr.bf16.mxu0 %v741_v0  ;;  %536 = vmatprep.mubr.msk.bf16.mxu0 %vm742_vm0, %v741_v0  ;;  %v593_v3 = vld [vmem:[#allocation5 + $0x10] sm:$0xff]   ;;  %v599_v4 = vld [vmem:[#allocation7] sm:$0xff]   ;;  %v594_v5 = vld [vmem:[#allocation5 + $0x18] sm:$0xff]   ;;  %s743_s9 = smov [#allocation10]  }
  0x4c   :  { %540 = vmatprep.subr.bf16.mxu1 %v741_v0  ;;  %556 = vmatprep.mubr.msk.bf16.mxu1 %vm742_vm0, %v741_v0  ;;  %v600_v6 = vld [vmem:[#allocation7 + $0x8] sm:$0xff]   ;;  %v595_v7 = vld [vmem:[#allocation5 + $0x20] sm:$0xff]   ;;  %v601_v8 = vld [vmem:[#allocation7 + $0x10] sm:$0xff]   ;;  %s443_s10 = sshll.u32 %s743_s9, 4  ;;  %s444_s10 = int_to_ptr.vmem [resolvable:$true] %s443_s10 }
  0x4d   :  { %521 = vmatpush3.bf16.msra.mxu0 %v591_v1  ;;  %541 = vmatpush3.bf16.msra.mxu1 %v599_v4  ;;  %v596_v9 = vld [vmem:[#allocation5 + $0x28] sm:$0xff]   ;;  %v602_v10 = vld [vmem:[#allocation7 + $0x18] sm:$0xff]   ;;  %v597_v11 = vld [vmem:[#allocation5 + $0x30] sm:$0xff]   ;;  %p708_p5 = scmp.lt.s32.totalorder %s444_s10, %s444_s10 }
  0x4e   :  { %522 = vmatprep.subr.bf16.mxu0 %v741_v0  ;;  %542 = vmatprep.subr.bf16.mxu1 %v741_v0  ;;  %v603_v12 = vld [vmem:[#allocation7 + $0x20] sm:$0xff]   ;;  %v598_v13 = vld [vmem:[#allocation5 + $0x38] sm:$0xff]   ;;  %v83_v14 = vld [vmem:[#allocation2] sm:$0xff] }
  0x4f   :  { %v84_v15 = vld [vmem:[#allocation2 + $0x8] sm:$0xff]  ;;  %v604_v16 = vld [vmem:[#allocation7 + $0x28] sm:$0xff]   ;;  %v605_v18 = vld [vmem:[#allocation7 + $0x30] sm:$0xff]  }
  0x50   :  { %v85_v17 = vpack.c.bf16 %v84_v15, %v83_v14  ;;  %v606_v19 = vld [vmem:[#allocation7 + $0x38] sm:$0xff]   ;;  %v607_v20 = vld [vmem:[#allocation8] sm:$0xff]   ;;  %v608_v21 = vld [vmem:[#allocation8 + $0x8] sm:$0xff]  }
  0x51   :  { %523 = vmatpush3.bf16.msra.mxu0 %v592_v2  ;;  %543 = vmatpush3.bf16.msra.mxu1 %v600_v6  ;;  %v609_v22 = vld [vmem:[#allocation8 + $0x10] sm:$0xff]   ;;  %v610_v23 = vld [vmem:[#allocation8 + $0x18] sm:$0xff]   ;;  %v611_v24 = vld [vmem:[#allocation8 + $0x20] sm:$0xff]  }
  0x52   :  { %524 = vmatprep.subr.bf16.mxu0 %v741_v0  ;;  %544 = vmatprep.subr.bf16.mxu1 %v741_v0  ;;  %v612_v25 = vld [vmem:[#allocation8 + $0x28] sm:$0xff]   ;;  %v457_v26 = vld [vmem:[%s904_s2] ss:$0 sm:$0xff]  ;;  %v614_v37 = vld [vmem:[#allocation8 + $0x38] sm:$0xff]  }
  0x53   :  { %v613_v36 = vld [vmem:[#allocation8 + $0x30] sm:$0xff]  }
  0x54   :  { %v466_v38 = vld [vmem:[%s906_s4] ss:$0 sm:$0xff]  ;;  %s703_s4 = scalar_lea.vmem %s444_s10, 128 }
  0x55   :  { %525 = vmatpush3.bf16.msra.mxu0 %v593_v3  ;;  %545 = vmatpush3.bf16.msra.mxu1 %v601_v8  ;;  %v475_v48 = vld [vmem:[%s908_s6] ss:$0 sm:$0xff]  ;;  %p704_p4 = scmp.ne.s32.totalorder %s444_s10, %s703_s4  ;;  %p709_p6 = scmp.lt.s32.totalorder %s703_s4, %s703_s4 }
  0x56   :  { %526 = vmatprep.subr.bf16.mxu0 %v741_v0  ;;  %546 = vmatprep.subr.bf16.mxu1 %v741_v0 }
  0x57   :  { %p710_p7 = por %p709_p6, %p708_p5 }
  0x59   :  { %527 = vmatpush3.bf16.msra.mxu0 %v594_v5  ;;  %547 = vmatpush3.bf16.msra.mxu1 %v602_v10  ;;  %p711_p8 = pnand %p710_p7, %p704_p4 }
  0x5a   :  { %528 = vmatprep.subr.bf16.mxu0 %v741_v0  ;;  %548 = vmatprep.subr.bf16.mxu1 %v741_v0 }
  0x5d   :  { %529 = vmatpush3.bf16.msra.mxu0 %v595_v7  ;;  %549 = vmatpush3.bf16.msra.mxu1 %v603_v12 }
  0x5e   :  { %530 = vmatprep.subr.bf16.mxu0 %v741_v0  ;;  %550 = vmatprep.subr.bf16.mxu1 %v741_v0 }
  0x61   :  { %531 = vmatpush3.bf16.msra.mxu0 %v596_v9  ;;  %551 = vmatpush3.bf16.msra.mxu1 %v604_v16 }
  0x62   :  { %532 = vmatprep.subr.bf16.mxu0 %v741_v0  ;;  %552 = vmatprep.subr.bf16.mxu1 %v741_v0 }
  0x65   :  { %533 = vmatpush3.bf16.msra.mxu0 %v597_v11  ;;  %553 = vmatpush3.bf16.msra.mxu1 %v605_v18 }
  0x66   :  { %534 = vmatprep.subr.bf16.mxu0 %v741_v0  ;;  %554 = vmatprep.subr.bf16.mxu1 %v741_v0 }
  0x69   :  { %535 = vmatpush3.bf16.msra.mxu0 %v598_v13  ;;  %555 = vmatpush3.bf16.msra.mxu1 %v606_v19 }
  0x6a   :  { %560 = vmatprep.subr.bf16.mxu0 %v741_v0 }
  0x6c   :  { %537 = vmatmul.mubr.bf16.vlgmr.msra.gmra.mrb[0].mxu0 %v85_v17 }
  0x6d   :  { %576 = vmatprep.mubr.msk.bf16.mxu0 %vm742_vm0, %v741_v0  ;;  %561 = vmatpush3.bf16.msra.mxu0 %v607_v20 }
  0x6e   :  { %562 = vmatprep.subr.bf16.mxu0 %v741_v0 }
  0x71   :  { %563 = vmatpush3.bf16.msra.mxu0 %v608_v21 }
  0x72   :  { %564 = vmatprep.subr.bf16.mxu0 %v741_v0 }
  0x75   :  { %565 = vmatpush3.bf16.msra.mxu0 %v609_v22 }
  0x76   :  { %566 = vmatprep.subr.bf16.mxu0 %v741_v0 }
  0x79   :  { %567 = vmatpush3.bf16.msra.mxu0 %v610_v23 }
  0x7a   :  { %568 = vmatprep.subr.bf16.mxu0 %v741_v0 }
  0x7d   :  { %569 = vmatpush3.bf16.msra.mxu0 %v611_v24 }
  0x7e   :  { %570 = vmatprep.subr.bf16.mxu0 %v741_v0 }
  0x81   :  { %571 = vmatpush3.bf16.msra.mxu0 %v612_v25 }
  0x82   :  { %572 = vmatprep.subr.bf16.mxu0 %v741_v0 }
  0x85   :  { %573 = vmatpush3.bf16.msra.mxu0 %v613_v36 }
  0x86   :  { %574 = vmatprep.subr.bf16.mxu0 %v741_v0 }
  0x89   :  { %575 = vmatpush3.bf16.msra.mxu0 %v614_v37 }
 0x13f   :  { %v191_v27 = vpop.f32.mrb[0].mxu0 }
 0x140   :  { %v192_v28 = vadd.f32 %v457_v26, %v191_v27  ;;  %v538_v29 = vpop.f32.mrb[1].mxu0 }
 0x141   :  { %v194_v30 = vpop.f32.mrb[2].mxu0 }
 0x142   :  { %v195_v31 = vadd.f32 %v457_v26, %v194_v30  ;;  %v539_v32 = vpop.f32.mrb[3].mxu0  ;;  %v198_v33 = vmax.f32 %v192_v28, 0.0 }
 0x144   :  { %v199_v34 = vmax.f32 %v195_v31, 0.0 }
 0x146   :  { %v200_v35 = vpack.c.bf16 %v199_v34, %v198_v33 }
 0x148   :  { %557 = vmatmul.mubr.bf16.vlgmr.msra.gmra.mrb[0].mxu1 %v200_v35 }
 0x21b   :  { %v306_v39 = vpop.f32.mrb[0].mxu1 }
 0x21c   :  { %v307_v40 = vadd.f32 %v466_v38, %v306_v39  ;;  %v558_v41 = vpop.f32.mrb[1].mxu1 }
 0x21d   :  { %v309_v42 = vpop.f32.mrb[2].mxu1 }
 0x21e   :  { %v310_v43 = vadd.f32 %v466_v38, %v309_v42  ;;  %v559_v44 = vpop.f32.mrb[3].mxu1  ;;  %v313_v45 = vmax.f32 %v307_v40, 0.0 }
 0x220   :  { %v314_v46 = vmax.f32 %v310_v43, 0.0 }
 0x222   :  { %v315_v47 = vpack.c.bf16 %v314_v46, %v313_v45 }
 0x224   :  { %577 = vmatmul.mubr.bf16.vlgmr.msra.gmra.mrb[4].mxu0 %v315_v47 }
 0x2f7   :  { %v421_v49 = vpop.f32.mrb[4].mxu0 }
 0x2f8   :  { %v578_v50 = vpop.f32.mrb[5].mxu0  ;;  %v422_v52 = vadd.f32 %v475_v48, %v421_v49 }
 0x2f9   :  { %v424_v51 = vpop.f32.mrb[6].mxu0 }
 0x2fa   :  { %v425_v53 = vadd.f32 %v475_v48, %v424_v51  ;;  %v579_v54 = vpop.f32.mrb[7].mxu0 }
 0x2fc   :  { %v491_v55 = vpack.c.bf16 %v425_v53, %v422_v52 }
 0x2fe   :  { %492 = vst [vmem:[#allocation10] sm:$0xff] %v491_v55  }
 0x2ff   :  { %714 = shalt.err (!%p711_p8)
}
 0x300   :  { %s715_s14 = scalar_lea.hbm %s909_s7, 128 }
 0x301   :  { %p716_p9 = scmp.ne.s32.totalorder %s909_s7, %s715_s14  ;;  %p719_p10 = scmp.lt.u32.totalorder %s715_s14, %s909_s7 }
 0x303   :  { %p721_p11 = pnand %p719_p10, %p716_p9 }
 0x305   :  { %724 = shalt.err (!%p721_p11)
}
 0x306   :  { %449 = dma.vmem_to_hbm [thread:$0]  %s444_s10, 128, %s909_s7, [#allocation4], %s734_s11, %s734_s11, %s735_s12  }
 0x307   :  { %731 = dma.done.wait [#allocation4], 128  }
 0x308   :  { %732 = vsyncadd [#allocation4], 4294967168 }
 0x309   :  { %453 = vsyncpa [#allocation3], 1 }
 0x30a   :  { %454 = vsyncpa [#allocation6], 1 }
 0x30b   :  { %455 = vsyncpa [#allocation9], 1 }
 0x30c   :  { %456 = vsyncpa [#allocation4], 1 }

</bundles_post_ra>
